<compile_context>
chip_gen: v6e
topology: v6e:2x2x1
jax: 0.10.0
libtpu: 0.0.40
codegen_flags: <defaults>
</compile_context>

<pallas_src>
import math
import functools

import jax
import jax.numpy as jnp
import numpy as np
from jax.experimental import pallas as pl
from jax.experimental.pallas import tpu as pltpu


# ---------------------------------------------------------------------------
# Parameter setup (buffer 'pe' from the module's __init__)
# ---------------------------------------------------------------------------
def make_positional_encoding(max_len: int, d_model: int) -> jax.Array:
    position = jnp.arange(max_len, dtype=jnp.float32)[:, None]            # (max_len, 1)
    div_term = jnp.exp(
        jnp.arange(0, d_model, 2, dtype=jnp.float32) * (-math.log(10000.0) / d_model)
    )                                                                     # (d_model/2,)
    pe = jnp.zeros((max_len, d_model), jnp.float32)
    pe = pe.at[:, 0::2].set(jnp.sin(position * div_term))
    pe = pe.at[:, 1::2].set(jnp.cos(position * div_term))
    return pe[:, None, :]                                                 # (max_len, 1, d_model)


# ---------------------------------------------------------------------------
# Kernels (operate on flattened (block_seq, B*D) tiles)
# ---------------------------------------------------------------------------
def _pe_add_kernel(x_ref, pe_ref, o_ref, *, d_model: int, batch: int):
    # x_ref/o_ref: (TS, B*D)   pe_ref: (TS, D)
    pe = pe_ref[...]
    for b in range(batch):                       # static unroll; D-aligned lane slices
        lo = b * d_model
        o_ref[:, lo:lo + d_model] = (x_ref[:, lo:lo + d_model] + pe).astype(o_ref.dtype)


def _pe_dropout_kernel(x_ref, pe_ref, bits_ref, o_ref, *,
                       d_model: int, batch: int, threshold: int, scale: float):
    # x_ref/o_ref/bits_ref: (TS, B*D)   pe_ref: (TS, D)
    pe = pe_ref[...]
    thr = jnp.uint32(threshold)
    for b in range(batch):
        lo = b * d_model
        y = x_ref[:, lo:lo + d_model] + pe
        keep = bits_ref[:, lo:lo + d_model] >= thr          # P(drop) = threshold / 2^32
        o_ref[:, lo:lo + d_model] = jnp.where(
            keep, y * scale, jnp.zeros_like(y)
        ).astype(o_ref.dtype)


# ---------------------------------------------------------------------------
# Wrapper
# ---------------------------------------------------------------------------
def _auto_block_seq(batch: int, d_model: int, with_bits: bool,
                    budget_bytes: int = 20 * 1024 * 1024) -> int:
    # bytes per seq row held in VMEM (x + out [+ bits] tiles + pe tile),
    # double-buffered by the pipeline
    row_bytes = (batch * d_model * 4) * (3 if with_bits else 2) + d_model * 4
    rows = budget_bytes // (2 * row_bytes)
    rows = int(max(8, min(rows, 2048)))
    return (rows // 8) * 8


def positional_encoding_forward(
    x: jax.Array,
    pe: jax.Array,
    *,
    dropout_p: float = 0.1,
    training: bool = False,
    rng: jax.Array | None = None,
    block_seq: int | None = None,
) -> jax.Array:
    S, B, D = x.shape
    assert pe.shape[0] >= S and pe.shape[-1] == D
    assert D % 128 == 0, "d_model must be a multiple of 128 for lane-aligned batch slices"
    assert 0.0 <= dropout_p <= 1.0

    apply_dropout = training and dropout_p > 0.0
    if apply_dropout and dropout_p >= 1.0:
        # torch.nn.Dropout(p=1.0) zeroes everything in training mode.
        return jnp.zeros_like(x)

    # Flatten: free reshapes of contiguous arrays, lane dim becomes B*D.
    x2d = x.reshape(S, B * D)
    pe2d = pe[:S].reshape(S, D)

    if block_seq is None:
        block_seq = _auto_block_seq(B, D, apply_dropout)
    block_seq = min(block_seq, S)
    if block_seq < S:
        block_seq = max(8, (block_seq // 8) * 8)
    grid = (pl.cdiv(S, block_seq),)

    x_spec = pl.BlockSpec((block_seq, B * D), lambda i: (i, 0))
    pe_spec = pl.BlockSpec((block_seq, D), lambda i: (i, 0))
    out_spec = pl.BlockSpec((block_seq, B * D), lambda i: (i, 0))

    compiler_params = pltpu.CompilerParams(
        dimension_semantics=("parallel",),          # no carried state -> shard over TCs (v7x)
        vmem_limit_bytes=32 * 1024 * 1024,          # raise v5e's 16 MiB default; safe on v7x
    )
    out_shape = jax.ShapeDtypeStruct((S, B * D), x.dtype)

    if apply_dropout:
        if rng is None:
            rng = jax.random.PRNGKey(0)
        bits = jax.random.bits(rng, (S, B * D), dtype=jnp.uint32)
        threshold = min((1 << 32) - 1, int(round(dropout_p * float(1 << 32))))
        scale = 1.0 / (1.0 - dropout_p)
        kernel = functools.partial(
            _pe_dropout_kernel, d_model=D, batch=B, threshold=threshold, scale=scale
        )
        out2d = pl.pallas_call(
            kernel,
            out_shape=out_shape,
            grid=grid,
            in_specs=[x_spec, pe_spec, pl.BlockSpec((block_seq, B * D), lambda i: (i, 0))],
            out_specs=out_spec,
            compiler_params=compiler_params,
        )(x2d, pe2d, bits)
    else:
        kernel = functools.partial(_pe_add_kernel, d_model=D, batch=B)
        out2d = pl.pallas_call(
            kernel,
            out_shape=out_shape,
            grid=grid,
            in_specs=[x_spec, pe_spec],
            out_specs=out_spec,
            compiler_params=compiler_params,
        )(x2d, pe2d)

    return out2d.reshape(S, B, D)


# ---------------------------------------------------------------------------
# Main
# ---------------------------------------------------------------------------
if __name__ == "__main__":
    d_model = 512
    max_len = 64
    seq_len = 8
    batch = 2
    dropout_p = 0.1

    key = jax.random.PRNGKey(0)
    kx, kd = jax.random.split(key)
    x = jax.random.normal(kx, (seq_len, batch, d_model), dtype=jnp.float32)
    pe = make_positional_encoding(max_len, d_model)
    ref = x + pe[:seq_len]

    # Eval-mode forward (dropout = identity): must match x + pe exactly.
    out_eval = positional_encoding_forward(x, pe, dropout_p=dropout_p, training=False)
    jax.block_until_ready(out_eval)
    np.testing.assert_allclose(np.asarray(out_eval), np.asarray(ref), rtol=1e-6, atol=1e-6)

    # Training-mode forward: exercises the in-kernel dropout mask/scale path.
    out_train = positional_encoding_forward(
        x, pe, dropout_p=dropout_p, training=True, rng=kd
    )
    jax.block_until_ready(out_train)
    ot = np.asarray(out_train)
    rf = np.asarray(ref)
    scale = 1.0 / (1.0 - dropout_p)
    dropped = ot == 0.0
    assert dropped.any() and (~dropped).any(), "dropout mask should drop some and keep some"
    assert np.allclose(ot[~dropped], (rf * scale)[~dropped], rtol=1e-5, atol=1e-5), \
        "dropout-kept elements should equal (x + pe) / (1 - p)"

    print("KERNEL_OK")
</pallas_src>

<mosaic_0001>
module attributes {stable_mosaic.version = 11 : i64} {
  func.func @_pe_add_kernel(%arg0: i32, %arg1: memref<8x1024xf32, #tpu.memory_space<vmem>>, %arg2: memref<8x512xf32, #tpu.memory_space<vmem>>, %arg3: memref<8x1024xf32, #tpu.memory_space<vmem>>) attributes {dimension_semantics = [#tpu.dimension_semantics<parallel>], iteration_bounds = array<i64: 1>, scalar_prefetch = 0 : i64, scratch_operands = 0 : i64, tpu.core_type = #tpu.core_type<tc>, window_params = [{transform_indices = @transform_0, window_bounds = array<i64: 8, 1024>}, {transform_indices = @transform_1, window_bounds = array<i64: 8, 512>}, {transform_indices = @transform_2, window_bounds = array<i64: 8, 1024>}]} {
    %c0 = arith.constant 0 : index
    %c0_0 = arith.constant 0 : index
    %0 = vector.load %arg2[%c0, %c0_0] : memref<8x512xf32, #tpu.memory_space<vmem>>, vector<8x512xf32>
    %c0_1 = arith.constant 0 : index
    %c0_2 = arith.constant 0 : index
    %1 = vector.load %arg1[%c0_1, %c0_2] : memref<8x1024xf32, #tpu.memory_space<vmem>>, vector<8x512xf32>
    %2 = arith.addf %1, %0 : vector<8x512xf32>
    %c0_3 = arith.constant 0 : index
    %c0_4 = arith.constant 0 : index
    %3 = vector.load %arg3[%c0_3, %c0_4] : memref<8x1024xf32, #tpu.memory_space<vmem>>, vector<8x512xf32>
    tpu.vector_store %arg3[%c0_3, %c0_4], %2 {strides = array<i32>} : memref<8x1024xf32, #tpu.memory_space<vmem>>, vector<8x512xf32>,
    %c0_5 = arith.constant 0 : index
    %c512 = arith.constant 512 : index
    %4 = vector.load %arg1[%c0_5, %c512] : memref<8x1024xf32, #tpu.memory_space<vmem>>, vector<8x512xf32>
    %5 = arith.addf %4, %0 : vector<8x512xf32>
    %c0_6 = arith.constant 0 : index
    %c512_7 = arith.constant 512 : index
    %6 = vector.load %arg3[%c0_6, %c512_7] : memref<8x1024xf32, #tpu.memory_space<vmem>>, vector<8x512xf32>
    tpu.vector_store %arg3[%c0_6, %c512_7], %5 {strides = array<i32>} : memref<8x1024xf32, #tpu.memory_space<vmem>>, vector<8x512xf32>,
    return
  }
  func.func @transform_0(%arg0: i32) -> (i32, i32) {
    %c0_i32 = arith.constant 0 : i32
    %c0_i32_0 = arith.constant 0 : i32
    return %arg0, %c0_i32 : i32, i32
  }
  func.func @transform_1(%arg0: i32) -> (i32, i32) {
    %c0_i32 = arith.constant 0 : i32
    %c0_i32_0 = arith.constant 0 : i32
    return %arg0, %c0_i32 : i32, i32
  }
  func.func @transform_2(%arg0: i32) -> (i32, i32) {
    %c0_i32 = arith.constant 0 : i32
    %c0_i32_0 = arith.constant 0 : i32
    return %arg0, %c0_i32 : i32, i32
  }
}

</mosaic_0001>

<bundles_post_ra>
// kernel: tpu_custom_call.1
= control target key start
LH: loop header
LB: loop body
LE: loop exit
PB: predicated region body
PF: predicated region fallthrough
CT: control target
= control target key end

     0   :  { %7 = vsyncpa [#allocation3], 0  ;;  %s176_s0 = inlined_call_operand.hbm [shape: f32[8,1024], index: 0, kind: input, shape index: {}]   ;;  %s177_s1 = inlined_call_operand.hbm [shape: f32[8,512], index: 1, kind: input, shape index: {}]   ;;  %s178_s2 = inlined_call_operand.hbm [shape: f32[8,1024], index: 2, kind: output, shape index: {}]  }
   0x1   :  { %8 = vsyncpa [#allocation6], 0 }
   0x2   :  { %9 = vsyncpa [#allocation4], 0  ;;  %s149_s9 = smov [#allocation2]   ;;  %s150_s11 = smov [#allocation5]  }
   0x3   :  { %s16_s10 = sshll.u32 %s149_s9, 4  ;;  %s26_s12 = sshll.u32 %s150_s11, 4  ;;  %s17_s10 = int_to_ptr.vmem [resolvable:$true] %s16_s10  ;;  %s27_s12 = int_to_ptr.vmem [resolvable:$true] %s26_s12 }
   0x4   :  { %s91_s13 = scalar_lea.vmem %s17_s10, 1024  ;;  %p96_p1 = scmp.lt.s32.totalorder %s17_s10, %s17_s10 }
   0x5   :  { %p92_p0 = scmp.ne.s32.totalorder %s17_s10, %s91_s13  ;;  %p97_p2 = scmp.lt.s32.totalorder %s91_s13, %s91_s13 }
   0x7   :  { %p98_p3 = por %p97_p2, %p96_p1 }
   0x9   :  { %p99_p4 = pnand %p98_p3, %p92_p0 }
   0xb   :  { %102 = shalt.err (!%p99_p4)
}
   0xc   :  { %19 = dma.hbm_to_vmem [thread:$0]  %s176_s0, 1024, %s17_s10, [#allocation3]  }
   0xd   :  { %s111_s16 = scalar_lea.vmem %s27_s12, 512  ;;  %p116_p6 = scmp.lt.s32.totalorder %s27_s12, %s27_s12 }
   0xe   :  { %p112_p5 = scmp.ne.s32.totalorder %s27_s12, %s111_s16  ;;  %p117_p7 = scmp.lt.s32.totalorder %s111_s16, %s111_s16 }
  0x10   :  { %p118_p8 = por %p117_p7, %p116_p6 }
  0x12   :  { %p119_p9 = pnand %p118_p8, %p112_p5 }
  0x14   :  { %122 = shalt.err (!%p119_p9)
}
  0x15   :  { %29 = dma.hbm_to_vmem [thread:$0]  %s177_s1, 512, %s27_s12, [#allocation6]  }
  0x16   :  { %143 = dma.done.wait [#allocation3], 1024  }
  0x17   :  { %144 = vsyncadd [#allocation3], 4294966272 }
  0x18   :  { %145 = dma.done.wait [#allocation6], 512  }
  0x19   :  { %146 = vsyncadd [#allocation6], 4294966784  ;;  %v36_v0 = vld [vmem:[#allocation5] sm:$0xff]  ;;  %v37_v2 = vld [vmem:[#allocation5 + $0x8] sm:$0xff]  ;;  %s151_s0 = smov [#allocation7]  }
  0x1a   :  { %v40_v1 = vld [vmem:[#allocation2] sm:$0xff]  ;;  %v41_v4 = vld [vmem:[#allocation2 + $0x8] sm:$0xff]  ;;  %v38_v5 = vld [vmem:[#allocation5 + $0x10] sm:$0xff]  ;;  %s70_s19 = sshll.u32 %s151_s0, 4  ;;  %s71_s19 = int_to_ptr.vmem [resolvable:$true] %s70_s19 }
  0x1b   :  { %v44_v3 = vadd.f32 %v40_v1, %v36_v0  ;;  %v42_v6 = vld [vmem:[#allocation2 + $0x10] sm:$0xff]  ;;  %v45_v7 = vadd.f32 %v41_v4, %v37_v2  ;;  %v39_v9 = vld [vmem:[#allocation5 + $0x18] sm:$0xff]  ;;  %v52_v11 = vld [vmem:[#allocation2 + $0x20] sm:$0xff]  ;;  %s123_s1 = scalar_lea.vmem %s71_s19, 1024  ;;  %p128_p11 = scmp.lt.s32.totalorder %s71_s19, %s71_s19 }
  0x1c   :  { %v46_v8 = vadd.f32 %v42_v6, %v38_v5  ;;  %v43_v10 = vld [vmem:[#allocation2 + $0x18] sm:$0xff]  ;;  %v56_v13 = vadd.f32 %v52_v11, %v36_v0  ;;  %v53_v14 = vld [vmem:[#allocation2 + $0x28] sm:$0xff]  ;;  %v54_v15 = vld [vmem:[#allocation2 + $0x30] sm:$0xff]  ;;  %p124_p10 = scmp.ne.s32.totalorder %s71_s19, %s123_s1  ;;  %p129_p12 = scmp.lt.s32.totalorder %s123_s1, %s123_s1 }
  0x1d   :  { %48 = vst [vmem:[#allocation7] sm:$0xff] %v44_v3  ;;  %v47_v12 = vadd.f32 %v43_v10, %v39_v9  ;;  %v55_v16 = vld [vmem:[#allocation2 + $0x38] sm:$0xff]  ;;  %49 = vst [vmem:[#allocation7 + $0x8] sm:$0xff] %v45_v7  ;;  %v57_v17 = vadd.f32 %v53_v14, %v37_v2  ;;  %v58_v18 = vadd.f32 %v54_v15, %v38_v5 }
  0x1e   :  { %50 = vst [vmem:[#allocation7 + $0x10] sm:$0xff] %v46_v8  ;;  %v59_v19 = vadd.f32 %v55_v16, %v39_v9  ;;  %60 = vst [vmem:[#allocation7 + $0x20] sm:$0xff] %v56_v13  ;;  %p130_p13 = por %p129_p12, %p128_p11 }
  0x1f   :  { %51 = vst [vmem:[#allocation7 + $0x18] sm:$0xff] %v47_v12  ;;  %61 = vst [vmem:[#allocation7 + $0x28] sm:$0xff] %v57_v17 }
  0x20   :  { %62 = vst [vmem:[#allocation7 + $0x30] sm:$0xff] %v58_v18  ;;  %63 = vst [vmem:[#allocation7 + $0x38] sm:$0xff] %v59_v19  ;;  %p131_p0 = pnand %p130_p13, %p124_p10 }
  0x22   :  { %134 = shalt.err (!%p131_p0)
}
  0x23   :  { %73 = dma.vmem_to_hbm [thread:$0]  %s71_s19, 1024, %s178_s2, [#allocation4]  }
  0x24   :  { %147 = dma.done.wait [#allocation4], 1024  }
  0x25   :  { %148 = vsyncadd [#allocation4], 4294966272 }
  0x26   :  { %77 = vsyncpa [#allocation3], 1 }
  0x27   :  { %78 = vsyncpa [#allocation6], 1 }
  0x28   :  { %79 = vsyncpa [#allocation4], 1 }

</bundles_post_ra>
